<compile_context>
chip_gen: v7x
topology: tpu7x:2x2x1
jax: 0.10.0
libtpu: 0.0.40
codegen_flags: <defaults>
</compile_context>

<pallas_src>
import jax
import jax.numpy as jnp
from jax.experimental import pallas as pl
from jax.experimental.pallas import tpu as pltpu

EPS = 1e-5  # matches torch.nn.BatchNorm2d default
VMEM_SPEC = pl.BlockSpec(memory_space=pltpu.MemorySpace.VMEM)
TILE_M_CAP = 512  # safe for v7x's 32 MiB default scoped VMEM, good DMA efficiency


def _choose_tile(m, cap=TILE_M_CAP):
    """Largest tile <= cap that divides m (falls back to m)."""
    t = min(cap, m)
    while t > 8:
        if m % t == 0:
            return t
        t //= 2
    return t if (t > 0 and m % t == 0) else m


# ----------------------------------------------------------------------------
# Pallas kernels
# ----------------------------------------------------------------------------
def _matmul_stats_kernel(x_ref, w_ref, y_ref, stats_ref):
    """Pass 1: conv-as-matmul (bf16 in, f32 acc) + per-channel sum / sum-of-squares.

    stats_ref is a (2, Cout) accumulator resident across the M grid axis:
      row 0 = sum(y), row 1 = sum(y*y).
    """
    @pl.when(pl.program_id(0) == 0)
    def _():
        stats_ref[...] = jnp.zeros_like(stats_ref)

    y = jnp.dot(x_ref[...], w_ref[...], preferred_element_type=jnp.float32)
    y_ref[...] = y
    s = jnp.sum(y, axis=0, keepdims=True)
    ss = jnp.sum(y * y, axis=0, keepdims=True)
    stats_ref[...] = stats_ref[...] + jnp.concatenate([s, ss], axis=0)


def _make_bn_act_kernel(do_relu: bool, has_residual: bool, inv_m: float):
    """Pass 2: BN (batch stats) folded to scale/shift [+ residual] [+ ReLU]."""

    def kernel(*refs):
        if has_residual:
            y_ref, stats_ref, g_ref, bt_ref, r_ref, o_ref = refs
        else:
            y_ref, stats_ref, g_ref, bt_ref, o_ref = refs

        st = stats_ref[...]                       # (2, Cout) f32
        mean = st[0:1, :] * inv_m
        var = st[1:2, :] * inv_m - mean * mean
        # Guard against catastrophic cancellation producing tiny negatives.
        var = jnp.maximum(var, 0.0)
        scale = g_ref[...] * jax.lax.rsqrt(var + EPS)
        shift = bt_ref[...] - mean * scale

        y = y_ref[...] * scale + shift            # single fused scale/shift
        if has_residual:
            y = y + r_ref[...].astype(jnp.float32)
        if do_relu:
            y = jnp.maximum(y, 0.0)
        o_ref[...] = y.astype(o_ref.dtype)

    return kernel


def _pool_fc_kernel(x_ref, w_ref, b_ref, o_ref):
    """Global average pool over the spatial axis + Linear."""
    pooled = jnp.mean(x_ref[...].astype(jnp.float32), axis=1)     # (N, C)
    o_ref[...] = jnp.dot(pooled, w_ref[...],
                         preferred_element_type=jnp.float32) + b_ref[...]


# ----------------------------------------------------------------------------
# Pallas wrappers
# ----------------------------------------------------------------------------
def conv_bn(x2d, w, gamma, beta, residual=None, relu=True,
            out_dtype=jnp.bfloat16):
    """Conv (as matmul) + training-mode BatchNorm [+ residual] [+ ReLU].

    x2d: (M, K) pixels/patches; w: (K, Cout). Returns (M, Cout) in out_dtype.
    Conv bias is intentionally omitted (cancelled exactly by train-mode BN).
    """
    m_total, k = x2d.shape
    cout = w.shape[1]
    tile_m = _choose_tile(m_total)
    grid = (m_total // tile_m,)

    xb = x2d.astype(jnp.bfloat16)
    wb = w.astype(jnp.bfloat16)

    # ---- pass 1: matmul + per-channel sum / sum-of-squares -----------------
    y, stats = pl.pallas_call(
        _matmul_stats_kernel,
        out_shape=(jax.ShapeDtypeStruct((m_total, cout), jnp.float32),
                   jax.ShapeDtypeStruct((2, cout), jnp.float32)),
        grid=grid,
        in_specs=[pl.BlockSpec((tile_m, k), lambda i: (i, 0)),
                  pl.BlockSpec((k, cout), lambda i: (0, 0))],       # weight resident
        out_specs=(pl.BlockSpec((tile_m, cout), lambda i: (i, 0)),
                   pl.BlockSpec((2, cout), lambda i: (0, 0))),      # accumulator
        compiler_params=pltpu.CompilerParams(
            dimension_semantics=("arbitrary",)),                    # reduction axis
    )(xb, wb)

    # ---- pass 2: normalize + affine (+ residual) (+ relu) ------------------
    args = [y, stats, gamma.reshape(1, -1), beta.reshape(1, -1)]
    in_specs = [pl.BlockSpec((tile_m, cout), lambda i: (i, 0)),
                pl.BlockSpec((2, cout), lambda i: (0, 0)),
                pl.BlockSpec((1, cout), lambda i: (0, 0)),
                pl.BlockSpec((1, cout), lambda i: (0, 0))]
    if residual is not None:
        args.append(residual)
        in_specs.append(pl.BlockSpec((tile_m, cout), lambda i: (i, 0)))

    kernel = _make_bn_act_kernel(relu, residual is not None, 1.0 / m_total)
    return pl.pallas_call(
        kernel,
        out_shape=jax.ShapeDtypeStruct((m_total, cout), out_dtype),
        grid=grid,
        in_specs=in_specs,
        out_specs=pl.BlockSpec((tile_m, cout), lambda i: (i, 0)),
        compiler_params=pltpu.CompilerParams(
            dimension_semantics=("parallel",)),                     # independent tiles
    )(*args)


def pool_fc(x_nhwc, fc_w, fc_b):
    n, h, w, c = x_nhwc.shape
    return pl.pallas_call(
        _pool_fc_kernel,
        out_shape=jax.ShapeDtypeStruct((n, fc_w.shape[1]), jnp.float32),
        in_specs=[VMEM_SPEC] * 3,
        out_specs=VMEM_SPEC,
    )(x_nhwc.reshape(n, h * w, c), fc_w, fc_b.reshape(1, -1))


# ----------------------------------------------------------------------------
# Plain-JAX glue
# ----------------------------------------------------------------------------
def im2col(x, ksize, stride, padding):
    """x: (N, H, W, C) -> patches (N*Ho*Wo, ksize*ksize*C), K order = (kh, kw, Cin)."""
    n, h, w, c = x.shape
    xp = jnp.pad(x, ((0, 0), (padding, padding), (padding, padding), (0, 0)))
    ho = (h + 2 * padding - ksize) // stride + 1
    wo = (w + 2 * padding - ksize) // stride + 1
    patches = []
    for i in range(ksize):
        for j in range(ksize):
            patches.append(xp[:, i:i + stride * ho:stride, j:j + stride * wo:stride, :])
    p = jnp.concatenate(patches, axis=-1)       # (N, Ho, Wo, k*k*C)
    return p.reshape(n * ho * wo, ksize * ksize * c), (n, ho, wo)


def block_forward(x, bp):
    """Bottleneck Block forward, x: (N, H, W, Cin) NHWC (bf16)."""
    stride = bp["stride"]
    n, h, w, cin = x.shape
    cint = bp["w1"].shape[1]
    cout = bp["w3"].shape[1]

    # conv1 (1x1) + bn1 + relu
    y = conv_bn(x.reshape(n * h * w, cin), bp["w1"], bp["g1"], bp["be1"], relu=True)
    y = y.reshape(n, h, w, cint)

    # conv2 (3x3, stride, pad 1) + bn2 + relu
    patches, (_, ho, wo) = im2col(y, 3, stride, 1)
    y = conv_bn(patches, bp["w2"], bp["g2"], bp["be2"], relu=True)

    # shortcut
    if "ws" in bp:
        xs = x[:, ::stride, ::stride, :].reshape(n * ho * wo, cin)
        sc = conv_bn(xs, bp["ws"], bp["gs"], bp["bes"], relu=False)
    else:
        sc = x.reshape(n * ho * wo, cin)        # identity: cin == cout, stride == 1

    # conv3 (1x1) + bn3 + residual + relu
    y = conv_bn(y, bp["w3"], bp["g3"], bp["be3"], residual=sc, relu=True)
    return y.reshape(n, ho, wo, cout)


def resnet_forward(params, x_nchw):
    x = jnp.transpose(x_nchw, (0, 2, 3, 1)).astype(jnp.float32)   # NCHW -> NHWC
    n = x.shape[0]

    # stem: conv 3x3 pad 1 stride 1 + bn + relu
    patches, (_, ho, wo) = im2col(x, 3, 1, 1)
    y = conv_bn(patches, params["stem_w"], params["stem_g"], params["stem_be"],
                relu=True)
    y = y.reshape(n, ho, wo, -1)

    for bp in params["blocks"]:
        y = block_forward(y, bp)

    # avgpool over full spatial + fc
    return pool_fc(y, params["fc_w"], params["fc_b"])


# ----------------------------------------------------------------------------
# Deterministic parameter init (shapes match the PyTorch module's __init__).
# Conv biases are created for parity with the module but are not used in the
# forward: training-mode BatchNorm mean subtraction cancels them exactly.
# ----------------------------------------------------------------------------
def _conv_params(key, k, cin, cout):
    kw, kb = jax.random.split(key)
    fan_in = k * k * cin
    w = jax.random.normal(kw, (k * k * cin, cout), jnp.float32) / jnp.sqrt(fan_in)
    b = 0.01 * jax.random.normal(kb, (cout,), jnp.float32)
    return w, b


def _bn_params(key, c):
    kg, kb = jax.random.split(key)
    g = 1.0 + 0.1 * jax.random.normal(kg, (c,), jnp.float32)
    be = 0.1 * jax.random.normal(kb, (c,), jnp.float32)
    return g, be


def init_resnet_params(key, num_channels, num_classes,
                       channels_init=64, compression=4,
                       structure=((3, 64, 1), (4, 128, 2), (6, 256, 2), (3, 512, 2))):
    kit = iter(jax.random.split(key, 256))
    p = {}
    p["stem_w"], p["stem_b"] = _conv_params(next(kit), 3, num_channels, channels_init)
    p["stem_g"], p["stem_be"] = _bn_params(next(kit), channels_init)

    blocks = []
    c_cur = channels_init
    for nblocks, channels, stride in structure:
        for i in range(nblocks):
            s = stride if i == 0 else 1
            cint = channels // compression
            bp = {"stride": s}
            bp["w1"], bp["b1"] = _conv_params(next(kit), 1, c_cur, cint)
            bp["g1"], bp["be1"] = _bn_params(next(kit), cint)
            bp["w2"], bp["b2"] = _conv_params(next(kit), 3, cint, cint)
            bp["g2"], bp["be2"] = _bn_params(next(kit), cint)
            bp["w3"], bp["b3"] = _conv_params(next(kit), 1, cint, channels)
            bp["g3"], bp["be3"] = _bn_params(next(kit), channels)
            if channels != c_cur or s != 1:
                bp["ws"], bp["bs"] = _conv_params(next(kit), 1, c_cur, channels)
                bp["gs"], bp["bes"] = _bn_params(next(kit), channels)
            blocks.append(bp)
            c_cur = channels
    p["blocks"] = blocks

    kfw, kfb = jax.random.split(next(kit))
    p["fc_w"] = jax.random.normal(kfw, (c_cur, num_classes), jnp.float32) / jnp.sqrt(c_cur)
    p["fc_b"] = 0.01 * jax.random.normal(kfb, (num_classes,), jnp.float32)
    return p


# ----------------------------------------------------------------------------
if __name__ == "__main__":
    key = jax.random.PRNGKey(0)
    k_param, k_input = jax.random.split(key)

    batch, num_channels, size, num_classes = 2, 4, 16, 10
    params = init_resnet_params(k_param, num_channels, num_classes)

    # PyTorch-style NCHW input
    x = jax.random.normal(k_input, (batch, num_channels, size, size), jnp.float32)

    logits = resnet_forward(params, x)
    logits = jax.block_until_ready(logits)

    assert logits.shape == (batch, num_classes), logits.shape
    assert jnp.all(jnp.isfinite(logits))
    print("KERNEL_OK")
</pallas_src>

<mosaic_0001>
module attributes {stable_mosaic.version = 11 : i64} {
  func.func @_matmul_stats_kernel(%arg0: i32, %arg1: memref<512x36xbf16, #tpu.memory_space<vmem>>, %arg2: memref<36x64xbf16, #tpu.memory_space<vmem>>, %arg3: memref<512x64xf32, #tpu.memory_space<vmem>>, %arg4: memref<2x64xf32, #tpu.memory_space<vmem>>) attributes {dimension_semantics = [#tpu.dimension_semantics<arbitrary>], iteration_bounds = array<i64: 1>, scalar_prefetch = 0 : i64, scratch_operands = 0 : i64, tpu.core_type = #tpu.core_type<tc>, window_params = [{transform_indices = @transform_0, window_bounds = array<i64: 512, 36>}, {pipeline_mode = #tpu.pipeline_mode<synchronous>, transform_indices = @transform_1, window_bounds = array<i64: 36, 64>}, {transform_indices = @transform_2, window_bounds = array<i64: 512, 64>}, {pipeline_mode = #tpu.pipeline_mode<synchronous>, transform_indices = @transform_3, window_bounds = array<i64: 2, 64>}]} {
    %c0_i32 = arith.constant 0 : i32
    %0 = arith.cmpi eq, %arg0, %c0_i32 : i32
    %1 = arith.extui %0 : i1 to i32
    %c0_i32_0 = arith.constant 0 : i32
    %2 = arith.cmpi ne, %1, %c0_i32_0 : i32
    scf.if %2 {
      %cst_12 = arith.constant 0.000000e+00 : f32
      %16 = vector.broadcast %cst_12 : f32 to vector<2x64xf32>
      %c0_13 = arith.constant 0 : index
      %c0_14 = arith.constant 0 : index
      %17 = vector.load %arg4[%c0_13, %c0_14] : memref<2x64xf32, #tpu.memory_space<vmem>>, vector<2x64xf32>
      tpu.vector_store %arg4[%c0_13, %c0_14], %16 {strides = array<i32>} : memref<2x64xf32, #tpu.memory_space<vmem>>, vector<2x64xf32>,
    } else {
    }
    %c0 = arith.constant 0 : index
    %c0_1 = arith.constant 0 : index
    %3 = vector.load %arg1[%c0, %c0_1] : memref<512x36xbf16, #tpu.memory_space<vmem>>, vector<512x36xbf16>
    %c0_2 = arith.constant 0 : index
    %c0_3 = arith.constant 0 : index
    %4 = vector.load %arg2[%c0_2, %c0_3] : memref<36x64xbf16, #tpu.memory_space<vmem>>, vector<36x64xbf16>
    %cst = arith.constant dense<0.000000e+00> : vector<512x64xf32>
    %5 = tpu.matmul %3, %4, %cst {dimension_numbers = #tpu.dot_dimension_numbers<[1], [0], [0], [1], [0, 0, 1, 1], [], []>} : vector<512x36xbf16>, vector<36x64xbf16>, vector<512x64xf32> -> vector<512x64xf32>
    %c0_4 = arith.constant 0 : index
    %c0_5 = arith.constant 0 : index
    %6 = vector.load %arg3[%c0_4, %c0_5] : memref<512x64xf32, #tpu.memory_space<vmem>>, vector<512x64xf32>
    tpu.vector_store %arg3[%c0_4, %c0_5], %5 {strides = array<i32>} : memref<512x64xf32, #tpu.memory_space<vmem>>, vector<512x64xf32>,
    %cst_6 = arith.constant dense<0.000000e+00> : vector<64xf32>
    %7 = vector.multi_reduction <add>, %5, %cst_6 [0] : vector<512x64xf32> to vector<64xf32>
    %8 = vector.shape_cast %7 : vector<64xf32> to vector<1x64xf32>
    %9 = arith.mulf %5, %5 : vector<512x64xf32>
    %cst_7 = arith.constant dense<0.000000e+00> : vector<64xf32>
    %10 = vector.multi_reduction <add>, %9, %cst_7 [0] : vector<512x64xf32> to vector<64xf32>
    %11 = vector.shape_cast %10 : vector<64xf32> to vector<1x64xf32>
    %c0_8 = arith.constant 0 : index
    %c0_9 = arith.constant 0 : index
    %12 = vector.load %arg4[%c0_8, %c0_9] : memref<2x64xf32, #tpu.memory_space<vmem>>, vector<2x64xf32>
    %13 = tpu.concatenate %8, %11 in 0 : vector<1x64xf32>, vector<1x64xf32> -> vector<2x64xf32>
    %14 = arith.addf %12, %13 : vector<2x64xf32>
    %c0_10 = arith.constant 0 : index
    %c0_11 = arith.constant 0 : index
    %15 = vector.load %arg4[%c0_10, %c0_11] : memref<2x64xf32, #tpu.memory_space<vmem>>, vector<2x64xf32>
    tpu.vector_store %arg4[%c0_10, %c0_11], %14 {strides = array<i32>} : memref<2x64xf32, #tpu.memory_space<vmem>>, vector<2x64xf32>,
    return
  }
  func.func @transform_0(%arg0: i32) -> (i32, i32) {
    %c0_i32 = arith.constant 0 : i32
    %c0_i32_0 = arith.constant 0 : i32
    return %arg0, %c0_i32 : i32, i32
  }
  func.func @transform_1(%arg0: i32) -> (i32, i32) {
    %c0_i32 = arith.constant 0 : i32
    %c0_i32_0 = arith.constant 0 : i32
    %c0_i32_1 = arith.constant 0 : i32
    return %c0_i32, %c0_i32_0 : i32, i32
  }
  func.func @transform_2(%arg0: i32) -> (i32, i32) {
    %c0_i32 = arith.constant 0 : i32
    %c0_i32_0 = arith.constant 0 : i32
    return %arg0, %c0_i32 : i32, i32
  }
  func.func @transform_3(%arg0: i32) -> (i32, i32) {
    %c0_i32 = arith.constant 0 : i32
    %c0_i32_0 = arith.constant 0 : i32
    %c0_i32_1 = arith.constant 0 : i32
    return %c0_i32, %c0_i32_0 : i32, i32
  }
}

</mosaic_0001>

<bundles_post_ra>
// kernel: tpu_custom_call.1
= control target key start
LH: loop header
LB: loop body
LE: loop exit
PB: predicated region body
PF: predicated region fallthrough
CT: control target
= control target key end

     0   :  { %vm265_vm0 = vcmask 293888   ;;  %vm362_vm1 = vcmask 1041408   ;;  %s2064_s0 = inlined_call_operand.vmem [shape: bf16[512,36], index: 0, kind: input, shape index: {}]   ;;  %s2065_s1 = inlined_call_operand.vmem [shape: bf16[36,64], index: 1, kind: input, shape index: {}]   ;;  %s2066_s2 = inlined_call_operand.vmem [shape: f32[512,64], index: 2, kind: output, shape index: {0}]   ;;  %s2067_s3 = inlined_call_operand.hbm [shape: f32[2,64], index: 3, kind: output, shape index: {1}]  }
   0x1   :  { %v1256_v0 = vld [vmem:[%s2065_s1] sm:$0xff]   ;;  %v1257_v1 = vld [vmem:[%s2065_s1 + $0x8] sm:$0xff]   ;;  %v1258_v2 = vld [vmem:[%s2065_s1 + $0x10] ss:$0 sps:$4 sm:$0x33]  }
   0x2   :  { %1176 = vmatprep.subr.bf16.mxu0 %v1256_v0  ;;  %v1259_v3 = vld [vmem:[%s2064_s0] sm:$0xff]   ;;  %1246 = vmatprep.subr.bf16.mxu1 %v1256_v0  ;;  %v364_v4 = vsel %vm362_vm1, %v1258_v2, 0  ;;  %v1260_v5 = vld [vmem:[%s2064_s0 + $0x8] sm:$0xff]   ;;  %v1261_v6 = vld [vmem:[%s2064_s0 + $0x10] sm:$0xff]  }
   0x3   :  { %1177 = vmatpush3.bf16.msra.mxu0 %v1256_v0  ;;  %1249 = vmatpush3.bf16.msra.mxu1 %v1256_v0  ;;  %v1262_v7 = vld [vmem:[%s2064_s0 + $0x18] sm:$0xff]   ;;  %v1263_v8 = vld [vmem:[%s2064_s0 + $0x20] sm:$0xff]   ;;  %v1276_v10 = vld [vmem:[%s2064_s0 + $0x88] sm:$0xff]  }
   0x4   :  { %1178 = vmatprep.subr.bf16.mxu0 %v1257_v1  ;;  %1182 = vmatprep.mubr.msk.bf16.mxu0 %vm265_vm0, %v1259_v3  ;;  %v1275_v9 = vld [vmem:[%s2064_s0 + $0x80] sm:$0xff]   ;;  %v1277_v11 = vld [vmem:[%s2064_s0 + $0x90] sm:$0xff]   ;;  %v1264_v12 = vld [vmem:[%s2064_s0 + $0x28] sm:$0xff]  }
   0x5   :  { %1247 = vmatprep.subr.bf16.mxu1 %v1257_v1  ;;  %1214 = vmatprep.mubr.msk.bf16.mxu1 %vm265_vm0, %v1275_v9  ;;  %v1265_v13 = vld [vmem:[%s2064_s0 + $0x30] sm:$0xff]   ;;  %v1278_v14 = vld [vmem:[%s2064_s0 + $0x98] sm:$0xff]   ;;  %v1279_v15 = vld [vmem:[%s2064_s0 + $0xa0] sm:$0xff]  }
   0x6   :  { %v1266_v16 = vld [vmem:[%s2064_s0 + $0x38] sm:$0xff]   ;;  %v1280_v17 = vld [vmem:[%s2064_s0 + $0xa8] sm:$0xff]  }
   0x7   :  { %1179 = vmatpush3.bf16.msra.mxu0 %v1257_v1  ;;  %1250 = vmatpush3.bf16.msra.mxu1 %v1257_v1 }
   0x8   :  { %1252 = vmatprep.subr.msk.bf16.mxu0 %vm362_vm1, %v1258_v2  ;;  %1253 = vmatprep.subr.msk.bf16.mxu1 %vm362_vm1, %v1258_v2 }
   0xb   :  { %1181 = vmatpush3.bf16.msra.mxu0 %v364_v4  ;;  %1251 = vmatpush3.bf16.msra.mxu1 %v364_v4 }
   0xe   :  { %1183 = vmatmul.mubr.msk.bf16.vlgmr.msra.gmra.mrb[0].mxu0 %vm265_vm0, %v1260_v5  ;;  %1215 = vmatmul.mubr.msk.bf16.vlgmr.msra.gmra.mrb[0].mxu1 %vm265_vm0, %v1276_v10 }
   0xf   :  { %1186 = vmatprep.mubr.msk.bf16.mxu0 %vm265_vm0, %v1261_v6  ;;  %1218 = vmatprep.mubr.msk.bf16.mxu1 %vm265_vm0, %v1277_v11 }
  0x16   :  { %1187 = vmatmul.mubr.msk.bf16.gmra.mrb[4].mxu0 %vm265_vm0, %v1262_v7  ;;  %1219 = vmatmul.mubr.msk.bf16.gmra.mrb[4].mxu1 %vm265_vm0, %v1278_v14 }
  0x17   :  { %1190 = vmatprep.mubr.msk.bf16.mxu0 %vm265_vm0, %v1263_v8  ;;  %1222 = vmatprep.mubr.msk.bf16.mxu1 %vm265_vm0, %v1279_v15 }
  0x1e   :  { %1191 = vmatmul.mubr.msk.bf16.gmra.mrb[8].mxu0 %vm265_vm0, %v1264_v12 }
  0x1f   :  { %1194 = vmatprep.mubr.msk.bf16.mxu0 %vm265_vm0, %v1265_v13 }
  0x20   :  { %9 = vsyncpa [#allocation3], 0  ;;  %v1267_v18 = vld [vmem:[%s2064_s0 + $0x40] sm:$0xff]   ;;  %v1281_v19 = vld [vmem:[%s2064_s0 + $0xb0] sm:$0xff]   ;;  %1223 = vmatmul.mubr.msk.bf16.gmra.mrb[8].mxu1 %vm265_vm0, %v1280_v17  ;;  %vm655_vm2 = vcmask 523264   ;;  %vm19_vm3 = vcmask 517120  }
  0x21   :  { %1226 = vmatprep.mubr.msk.bf16.mxu1 %vm265_vm0, %v1281_v19  ;;  %v1268_v20 = vld [vmem:[%s2064_s0 + $0x48] sm:$0xff]   ;;  %v1282_v21 = vld [vmem:[%s2064_s0 + $0xb8] sm:$0xff]   ;;  %v1269_v22 = vld [vmem:[%s2064_s0 + $0x50] sm:$0xff]   ;;  %vm1051_vm4 = vcmask 1040384  }
  0x22   :  { %v1283_v23 = vld [vmem:[%s2064_s0 + $0xc0] sm:$0xff]   ;;  %v1270_v24 = vld [vmem:[%s2064_s0 + $0x58] sm:$0xff]   ;;  %v1284_v25 = vld [vmem:[%s2064_s0 + $0xc8] sm:$0xff]  }
  0x23   :  { %v1271_v26 = vld [vmem:[%s2064_s0 + $0x60] sm:$0xff]   ;;  %v1285_v27 = vld [vmem:[%s2064_s0 + $0xd0] sm:$0xff]   ;;  %v1272_v28 = vld [vmem:[%s2064_s0 + $0x68] sm:$0xff]  }
  0x24   :  { %v1286_v29 = vld [vmem:[%s2064_s0 + $0xd8] sm:$0xff]   ;;  %v1273_v30 = vld [vmem:[%s2064_s0 + $0x70] sm:$0xff]   ;;  %v1287_v31 = vld [vmem:[%s2064_s0 + $0xe0] sm:$0xff]  }
  0x25   :  { %v1274_v32 = vld [vmem:[%s2064_s0 + $0x78] sm:$0xff]   ;;  %v1288_v33 = vld [vmem:[%s2064_s0 + $0xe8] sm:$0xff]   ;;  %v1289_v34 = vld [vmem:[%s2064_s0 + $0xf0] sm:$0xff]  }
  0x26   :  { %1195 = vmatmul.mubr.msk.bf16.gmra.mrb[12].mxu0 %vm265_vm0, %v1266_v16  ;;  %v1290_v35 = vld [vmem:[%s2064_s0 + $0xf8] sm:$0xff]  }
  0x27   :  { %1198 = vmatprep.mubr.msk.bf16.mxu0 %vm265_vm0, %v1267_v18 }
  0x28   :  { %1227 = vmatmul.mubr.msk.bf16.gmra.mrb[12].mxu1 %vm265_vm0, %v1282_v21 }
  0x29   :  { %1230 = vmatprep.mubr.msk.bf16.mxu1 %vm265_vm0, %v1283_v23 }
  0x2e   :  { %1199 = vmatmul.mubr.msk.bf16.gmra.mrb[16].mxu0 %vm265_vm0, %v1268_v20 }
  0x2f   :  { %1202 = vmatprep.mubr.msk.bf16.mxu0 %vm265_vm0, %v1269_v22 }
  0x30   :  { %1231 = vmatmul.mubr.msk.bf16.gmra.mrb[16].mxu1 %vm265_vm0, %v1284_v25 }
  0x31   :  { %1234 = vmatprep.mubr.msk.bf16.mxu1 %vm265_vm0, %v1285_v27 }
  0x36   :  { %1203 = vmatmul.mubr.msk.bf16.gmra.mrb[20].mxu0 %vm265_vm0, %v1270_v24  ;;  %v1315_v24 = vmov 0.0  }
  0x37   :  { %1206 = vmatprep.mubr.msk.bf16.mxu0 %vm265_vm0, %v1271_v26  ;;  %20 = vst.msk [vmem:[#allocation2] sm:$0x3] %vm19_vm3, %v1315_v24 }
  0x38   :  { %1235 = vmatmul.mubr.msk.bf16.gmra.mrb[20].mxu1 %vm265_vm0, %v1286_v29 }
  0x39   :  { %1238 = vmatprep.mubr.msk.bf16.mxu1 %vm265_vm0, %v1287_v31 }
  0x3e   :  { %1207 = vmatmul.mubr.msk.bf16.gmra.mrb[24].mxu0 %vm265_vm0, %v1272_v28 }
  0x3f   :  { %1210 = vmatprep.mubr.msk.bf16.mxu0 %vm265_vm0, %v1273_v30 }
  0x40   :  { %1239 = vmatmul.mubr.msk.bf16.gmra.mrb[24].mxu1 %vm265_vm0, %v1288_v33 }
  0x41   :  { %1242 = vmatprep.mubr.msk.bf16.mxu1 %vm265_vm0, %v1289_v34 }
  0x46   :  { %1211 = vmatmul.mubr.msk.bf16.gmra.mrb[28].mxu0 %vm265_vm0, %v1274_v32 }
  0x48   :  { %1243 = vmatmul.mubr.msk.bf16.gmra.mrb[28].mxu1 %vm265_vm0, %v1290_v35 }
  0xe1   :  { %v1184_v36 = vpop.f32.mrb[0].mxu0  ;;  %v1497_v55 = vpop.f32.mrb[0].mxu1 }
  0xe2   :  { %658 = vst.msk [vmem:[%s2066_s2 + $0x10] sm:$0xff] %vm655_vm2, %v1184_v36  ;;  %v400_v37 = vpop.f32.mrb[1].mxu0  ;;  %v855_v41 = vmul.f32 %v1184_v36, %v1184_v36  ;;  %v723_v46 = vsel %vm655_vm2, %v1184_v36, 0.0  ;;  %690 = vst.msk [vmem:[%s2066_s2 + $0x110] sm:$0xff] %vm655_vm2, %v1497_v55  ;;  %v1508_v59 = vpop.f32.mrb[1].mxu1 }
  0xe3   :  { %656 = vst.msk [vmem:[%s2066_s2] sm:$0xff] %vm655_vm2, %v400_v37  ;;  %v853_v38 = vmul.f32 %v400_v37, %v400_v37  ;;  %v1185_v39 = vpop.f32.mrb[2].mxu0  ;;  %v720_v42 = vsel %vm655_vm2, %v400_v37, 0.0  ;;  %688 = vst.msk [vmem:[%s2066_s2 + $0x100] sm:$0xff] %vm655_vm2, %v1508_v59  ;;  %v1521_v0 = vpop.f32.mrb[2].mxu1 }
  0xe4   :  { %659 = vst.msk [vmem:[%s2066_s2 + $0x18] sm:$0xff] %vm655_vm2, %v1185_v39  ;;  %v403_v40 = vpop.f32.mrb[3].mxu0  ;;  %v856_v48 = vmul.f32 %v1185_v39, %v1185_v39  ;;  %v920_v52 = vsel %vm655_vm2, %v855_v41, 0.0  ;;  %v725_v53 = vsel %vm655_vm2, %v1185_v39, 0.0  ;;  %691 = vst.msk [vmem:[%s2066_s2 + $0x118] sm:$0xff] %vm655_vm2, %v1521_v0  ;;  %v1532_v4 = vpop.f32.mrb[3].mxu1 }
  0xe5   :  { %657 = vst.msk [vmem:[%s2066_s2 + $0x8] sm:$0xff] %vm655_vm2, %v403_v40  ;;  %v721_v43 = vsel %vm655_vm2, %v403_v40, 0.0  ;;  %v854_v44 = vmul.f32 %v403_v40, %v403_v40  ;;  %v917_v47 = vsel %vm655_vm2, %v853_v38, 0.0  ;;  %689 = vst.msk [vmem:[%s2066_s2 + $0x108] sm:$0xff] %vm655_vm2, %v1532_v4 }
  0xe6   :  { %v722_v45 = vadd.f32 %v721_v43, %v720_v42  ;;  %v922_v60 = vsel %vm655_vm2, %v856_v48, 0.0 }
  0xe7   :  { %v918_v49 = vsel %vm655_vm2, %v854_v44, 0.0 }
  0xe8   :  { %v724_v50 = vadd.f32 %v723_v46, %v722_v45  ;;  %v919_v51 = vadd.f32 %v918_v49, %v917_v47 }
  0xe9   :  { %v1188_v54 = vpop.f32.mrb[4].mxu0  ;;  %v1549_v19 = vpop.f32.mrb[4].mxu1 }
  0xea   :  { %v921_v56 = vadd.f32 %v920_v52, %v919_v51  ;;  %662 = vst.msk [vmem:[%s2066_s2 + $0x30] sm:$0xff] %vm655_vm2, %v1188_v54  ;;  %v416_v57 = vpop.f32.mrb[5].mxu0  ;;  %v726_v58 = vadd.f32 %v725_v53, %v724_v50  ;;  %v859_v5 = vmul.f32 %v1188_v54, %v1188_v54  ;;  %v731_v11 = vsel %vm655_vm2, %v1188_v54, 0.0  ;;  %694 = vst.msk [vmem:[%s2066_s2 + $0x130] sm:$0xff] %vm655_vm2, %v1549_v19  ;;  %v1560_v23 = vpop.f32.mrb[5].mxu1 }
  0xeb   :  { %660 = vst.msk [vmem:[%s2066_s2 + $0x20] sm:$0xff] %vm655_vm2, %v416_v57  ;;  %v727_v61 = vsel %vm655_vm2, %v416_v57, 0.0  ;;  %v857_v62 = vmul.f32 %v416_v57, %v416_v57  ;;  %v1189_v63 = vpop.f32.mrb[6].mxu0  ;;  %692 = vst.msk [vmem:[%s2066_s2 + $0x120] sm:$0xff] %vm655_vm2, %v1560_v23  ;;  %v1574_v29 = vpop.f32.mrb[6].mxu1 }
  0xec   :  { %v728_v1 = vadd.f32 %v727_v61, %v726_v58  ;;  %v923_v2 = vadd.f32 %v922_v60, %v921_v56  ;;  %663 = vst.msk [vmem:[%s2066_s2 + $0x38] sm:$0xff] %vm655_vm2, %v1189_v63  ;;  %v419_v3 = vpop.f32.mrb[7].mxu0  ;;  %v860_v12 = vmul.f32 %v1189_v63, %v1189_v63  ;;  %v928_v16 = vsel %vm655_vm2, %v859_v5, 0.0  ;;  %695 = vst.msk [vmem:[%s2066_s2 + $0x138] sm:$0xff] %vm655_vm2, %v1574_v29  ;;  %v1585_v33 = vpop.f32.mrb[7].mxu1 }
  0xed   :  { %v924_v6 = vsel %vm655_vm2, %v857_v62, 0.0  ;;  %661 = vst.msk [vmem:[%s2066_s2 + $0x28] sm:$0xff] %vm655_vm2, %v419_v3  ;;  %v729_v7 = vsel %vm655_vm2, %v419_v3, 0.0  ;;  %v858_v8 = vmul.f32 %v419_v3, %v419_v3  ;;  %v733_v17 = vsel %vm655_vm2, %v1189_v63, 0.0  ;;  %693 = vst.msk [vmem:[%s2066_s2 + $0x128] sm:$0xff] %vm655_vm2, %v1585_v33 }
  0xee   :  { %v925_v9 = vadd.f32 %v924_v6, %v923_v2  ;;  %v730_v10 = vadd.f32 %v729_v7, %v728_v1  ;;  %v930_v25 = vsel %vm655_vm2, %v860_v12, 0.0 }
  0xef   :  { %v926_v13 = vsel %vm655_vm2, %v858_v8, 0.0 }
  0xf0   :  { %v732_v14 = vadd.f32 %v731_v11, %v730_v10  ;;  %v927_v15 = vadd.f32 %v926_v13, %v925_v9 }
  0xf1   :  { %v1192_v18 = vpop.f32.mrb[8].mxu0 }
  0xf2   :  { %v929_v20 = vadd.f32 %v928_v16, %v927_v15  ;;  %666 = vst.msk [vmem:[%s2066_s2 + $0x50] sm:$0xff] %vm655_vm2, %v1192_v18  ;;  %v432_v21 = vpop.f32.mrb[9].mxu0  ;;  %v734_v22 = vadd.f32 %v733_v17, %v732_v14  ;;  %v863_v34 = vmul.f32 %v1192_v18, %v1192_v18  ;;  %v739_v40 = vsel %vm655_vm2, %v1192_v18, 0.0 }
  0xf3   :  { %664 = vst.msk [vmem:[%s2066_s2 + $0x40] sm:$0xff] %vm655_vm2, %v432_v21  ;;  %v735_v26 = vsel %vm655_vm2, %v432_v21, 0.0  ;;  %v861_v27 = vmul.f32 %v432_v21, %v432_v21  ;;  %v1193_v28 = vpop.f32.mrb[10].mxu0  ;;  %v1602_v48 = vpop.f32.mrb[8].mxu1 }
  0xf4   :  { %v736_v30 = vadd.f32 %v735_v26, %v734_v22  ;;  %v931_v31 = vadd.f32 %v930_v25, %v929_v20  ;;  %667 = vst.msk [vmem:[%s2066_s2 + $0x58] sm:$0xff] %vm655_vm2, %v1193_v28  ;;  %v435_v32 = vpop.f32.mrb[11].mxu0  ;;  %v864_v41 = vmul.f32 %v1193_v28, %v1193_v28  ;;  %v936_v45 = vsel %vm655_vm2, %v863_v34, 0.0  ;;  %698 = vst.msk [vmem:[%s2066_s2 + $0x150] sm:$0xff] %vm655_vm2, %v1602_v48  ;;  %v1613_v52 = vpop.f32.mrb[9].mxu1 }
  0xf5   :  { %v932_v35 = vsel %vm655_vm2, %v861_v27, 0.0  ;;  %665 = vst.msk [vmem:[%s2066_s2 + $0x48] sm:$0xff] %vm655_vm2, %v435_v32  ;;  %v737_v36 = vsel %vm655_vm2, %v435_v32, 0.0  ;;  %v862_v37 = vmul.f32 %v435_v32, %v435_v32  ;;  %v741_v46 = vsel %vm655_vm2, %v1193_v28, 0.0  ;;  %696 = vst.msk [vmem:[%s2066_s2 + $0x140] sm:$0xff] %vm655_vm2, %v1613_v52  ;;  %v1626_v58 = vpop.f32.mrb[10].mxu1 }
  0xf6   :  { %v933_v38 = vadd.f32 %v932_v35, %v931_v31  ;;  %v738_v39 = vadd.f32 %v737_v36, %v736_v30  ;;  %v938_v53 = vsel %vm655_vm2, %v864_v41, 0.0  ;;  %699 = vst.msk [vmem:[%s2066_s2 + $0x158] sm:$0xff] %vm655_vm2, %v1626_v58  ;;  %v1637_v63 = vpop.f32.mrb[11].mxu1 }
  0xf7   :  { %v934_v42 = vsel %vm655_vm2, %v862_v37, 0.0  ;;  %697 = vst.msk [vmem:[%s2066_s2 + $0x148] sm:$0xff] %vm655_vm2, %v1637_v63 }
  0xf8   :  { %v740_v43 = vadd.f32 %v739_v40, %v738_v39  ;;  %v935_v44 = vadd.f32 %v934_v42, %v933_v38 }
  0xf9   :  { %v1196_v47 = vpop.f32.mrb[12].mxu0 }
  0xfa   :  { %v937_v49 = vadd.f32 %v936_v45, %v935_v44  ;;  %670 = vst.msk [vmem:[%s2066_s2 + $0x70] sm:$0xff] %vm655_vm2, %v1196_v47  ;;  %v448_v50 = vpop.f32.mrb[13].mxu0  ;;  %v742_v51 = vadd.f32 %v741_v46, %v740_v43  ;;  %v867_v1 = vmul.f32 %v1196_v47, %v1196_v47  ;;  %v747_v8 = vsel %vm655_vm2, %v1196_v47, 0.0 }
  0xfb   :  { %668 = vst.msk [vmem:[%s2066_s2 + $0x60] sm:$0xff] %vm655_vm2, %v448_v50  ;;  %v743_v54 = vsel %vm655_vm2, %v448_v50, 0.0  ;;  %v865_v56 = vmul.f32 %v448_v50, %v448_v50  ;;  %v1197_v57 = vpop.f32.mrb[14].mxu0  ;;  %v1654_v16 = vpop.f32.mrb[12].mxu1 }
  0xfc   :  { %v744_v60 = vadd.f32 %v743_v54, %v742_v51  ;;  %v939_v61 = vadd.f32 %v938_v53, %v937_v49  ;;  %671 = vst.msk [vmem:[%s2066_s2 + $0x78] sm:$0xff] %vm655_vm2, %v1197_v57  ;;  %v451_v62 = vpop.f32.mrb[15].mxu0  ;;  %v868_v9 = vmul.f32 %v1197_v57, %v1197_v57  ;;  %v944_v13 = vsel %vm655_vm2, %v867_v1, 0.0  ;;  %702 = vst.msk [vmem:[%s2066_s2 + $0x170] sm:$0xff] %vm655_vm2, %v1654_v16  ;;  %v1665_v21 = vpop.f32.mrb[13].mxu1 }
  0xfd   :  { %v940_v2 = vsel %vm655_vm2, %v865_v56, 0.0  ;;  %669 = vst.msk [vmem:[%s2066_s2 + $0x68] sm:$0xff] %vm655_vm2, %v451_v62  ;;  %v745_v3 = vsel %vm655_vm2, %v451_v62, 0.0  ;;  %v866_v5 = vmul.f32 %v451_v62, %v451_v62  ;;  %v749_v14 = vsel %vm655_vm2, %v1197_v57, 0.0  ;;  %700 = vst.msk [vmem:[%s2066_s2 + $0x160] sm:$0xff] %vm655_vm2, %v1665_v21  ;;  %v1678_v27 = vpop.f32.mrb[14].mxu1 }
  0xfe   :  { %v941_v6 = vadd.f32 %v940_v2, %v939_v61  ;;  %v746_v7 = vadd.f32 %v745_v3, %v744_v60  ;;  %v946_v22 = vsel %vm655_vm2, %v868_v9, 0.0  ;;  %703 = vst.msk [vmem:[%s2066_s2 + $0x178] sm:$0xff] %vm655_vm2, %v1678_v27  ;;  %v1689_v32 = vpop.f32.mrb[15].mxu1 }
  0xff   :  { %v942_v10 = vsel %vm655_vm2, %v866_v5, 0.0  ;;  %701 = vst.msk [vmem:[%s2066_s2 + $0x168] sm:$0xff] %vm655_vm2, %v1689_v32 }
 0x100   :  { %v748_v11 = vadd.f32 %v747_v8, %v746_v7  ;;  %v943_v12 = vadd.f32 %v942_v10, %v941_v6 }
 0x101   :  { %v1200_v15 = vpop.f32.mrb[16].mxu0 }
 0x102   :  { %v945_v17 = vadd.f32 %v944_v13, %v943_v12  ;;  %674 = vst.msk [vmem:[%s2066_s2 + $0x90] sm:$0xff] %vm655_vm2, %v1200_v15  ;;  %v464_v18 = vpop.f32.mrb[17].mxu0  ;;  %v750_v20 = vadd.f32 %v749_v14, %v748_v11  ;;  %v871_v34 = vmul.f32 %v1200_v15, %v1200_v15  ;;  %v755_v40 = vsel %vm655_vm2, %v1200_v15, 0.0 }
 0x103   :  { %672 = vst.msk [vmem:[%s2066_s2 + $0x80] sm:$0xff] %vm655_vm2, %v464_v18  ;;  %v751_v24 = vsel %vm655_vm2, %v464_v18, 0.0  ;;  %v869_v25 = vmul.f32 %v464_v18, %v464_v18  ;;  %v1201_v26 = vpop.f32.mrb[18].mxu0  ;;  %v1706_v49 = vpop.f32.mrb[16].mxu1 }
 0x104   :  { %v752_v28 = vadd.f32 %v751_v24, %v750_v20  ;;  %v947_v30 = vadd.f32 %v946_v22, %v945_v17  ;;  %675 = vst.msk [vmem:[%s2066_s2 + $0x98] sm:$0xff] %vm655_vm2, %v1201_v26  ;;  %v467_v31 = vpop.f32.mrb[19].mxu0  ;;  %v872_v41 = vmul.f32 %v1201_v26, %v1201_v26  ;;  %v952_v45 = vsel %vm655_vm2, %v871_v34, 0.0  ;;  %706 = vst.msk [vmem:[%s2066_s2 + $0x190] sm:$0xff] %vm655_vm2, %v1706_v49  ;;  %v1717_v54 = vpop.f32.mrb[17].mxu1 }
 0x105   :  { %v948_v35 = vsel %vm655_vm2, %v869_v25, 0.0  ;;  %673 = vst.msk [vmem:[%s2066_s2 + $0x88] sm:$0xff] %vm655_vm2, %v467_v31  ;;  %v753_v36 = vsel %vm655_vm2, %v467_v31, 0.0  ;;  %v870_v37 = vmul.f32 %v467_v31, %v467_v31  ;;  %v757_v46 = vsel %vm655_vm2, %v1201_v26, 0.0  ;;  %704 = vst.msk [vmem:[%s2066_s2 + $0x180] sm:$0xff] %vm655_vm2, %v1717_v54  ;;  %v1730_v62 = vpop.f32.mrb[18].mxu1 }
 0x106   :  { %v949_v38 = vadd.f32 %v948_v35, %v947_v30  ;;  %v754_v39 = vadd.f32 %v753_v36, %v752_v28  ;;  %v954_v56 = vsel %vm655_vm2, %v872_v41, 0.0  ;;  %707 = vst.msk [vmem:[%s2066_s2 + $0x198] sm:$0xff] %vm655_vm2, %v1730_v62  ;;  %v1741_v5 = vpop.f32.mrb[19].mxu1 }
 0x107   :  { %v950_v42 = vsel %vm655_vm2, %v870_v37, 0.0  ;;  %705 = vst.msk [vmem:[%s2066_s2 + $0x188] sm:$0xff] %vm655_vm2, %v1741_v5 }
 0x108   :  { %v756_v43 = vadd.f32 %v755_v40, %v754_v39  ;;  %v951_v44 = vadd.f32 %v950_v42, %v949_v38 }
 0x109   :  { %v1204_v47 = vpop.f32.mrb[20].mxu0 }
 0x10a   :  { %v953_v50 = vadd.f32 %v952_v45, %v951_v44  ;;  %678 = vst.msk [vmem:[%s2066_s2 + $0xb0] sm:$0xff] %vm655_vm2, %v1204_v47  ;;  %v480_v51 = vpop.f32.mrb[21].mxu0  ;;  %v758_v53 = vadd.f32 %v757_v46, %v756_v43  ;;  %v875_v6 = vmul.f32 %v1204_v47, %v1204_v47  ;;  %v763_v12 = vsel %vm655_vm2, %v1204_v47, 0.0 }
 0x10b   :  { %676 = vst.msk [vmem:[%s2066_s2 + $0xa0] sm:$0xff] %vm655_vm2, %v480_v51  ;;  %v759_v57 = vsel %vm655_vm2, %v480_v51, 0.0  ;;  %v873_v60 = vmul.f32 %v480_v51, %v480_v51  ;;  %v1205_v61 = vpop.f32.mrb[22].mxu0  ;;  %v1758_v24 = vpop.f32.mrb[20].mxu1 }
 0x10c   :  { %v760_v1 = vadd.f32 %v759_v57, %v758_v53  ;;  %v955_v2 = vadd.f32 %v954_v56, %v953_v50  ;;  %679 = vst.msk [vmem:[%s2066_s2 + $0xb8] sm:$0xff] %vm655_vm2, %v1205_v61  ;;  %v483_v3 = vpop.f32.mrb[23].mxu0  ;;  %v876_v13 = vmul.f32 %v1205_v61, %v1205_v61  ;;  %v960_v18 = vsel %vm655_vm2, %v875_v6, 0.0  ;;  %710 = vst.msk [vmem:[%s2066_s2 + $0x1b0] sm:$0xff] %vm655_vm2, %v1758_v24  ;;  %v1769_v30 = vpop.f32.mrb[21].mxu1 }
 0x10d   :  { %v956_v7 = vsel %vm655_vm2, %v873_v60, 0.0  ;;  %677 = vst.msk [vmem:[%s2066_s2 + $0xa8] sm:$0xff] %vm655_vm2, %v483_v3  ;;  %v761_v8 = vsel %vm655_vm2, %v483_v3, 0.0  ;;  %v874_v9 = vmul.f32 %v483_v3, %v483_v3  ;;  %v765_v20 = vsel %vm655_vm2, %v1205_v61, 0.0  ;;  %708 = vst.msk [vmem:[%s2066_s2 + $0x1a0] sm:$0xff] %vm655_vm2, %v1769_v30  ;;  %v1782_v37 = vpop.f32.mrb[22].mxu1 }
 0x10e   :  { %v957_v10 = vadd.f32 %v956_v7, %v955_v2  ;;  %v762_v11 = vadd.f32 %v761_v8, %v760_v1  ;;  %v962_v31 = vsel %vm655_vm2, %v876_v13, 0.0  ;;  %711 = vst.msk [vmem:[%s2066_s2 + $0x1b8] sm:$0xff] %vm655_vm2, %v1782_v37  ;;  %v1793_v41 = vpop.f32.mrb[23].mxu1 }
 0x10f   :  { %v958_v14 = vsel %vm655_vm2, %v874_v9, 0.0  ;;  %709 = vst.msk [vmem:[%s2066_s2 + $0x1a8] sm:$0xff] %vm655_vm2, %v1793_v41 }
 0x110   :  { %v764_v15 = vadd.f32 %v763_v12, %v762_v11  ;;  %v959_v17 = vadd.f32 %v958_v14, %v957_v10 }
 0x111   :  { %v1208_v22 = vpop.f32.mrb[24].mxu0 }
 0x112   :  { %v961_v25 = vadd.f32 %v960_v18, %v959_v17  ;;  %682 = vst.msk [vmem:[%s2066_s2 + $0xd0] sm:$0xff] %vm655_vm2, %v1208_v22  ;;  %v496_v26 = vpop.f32.mrb[25].mxu0  ;;  %v766_v28 = vadd.f32 %v765_v20, %v764_v15  ;;  %v879_v42 = vmul.f32 %v1208_v22, %v1208_v22  ;;  %v771_v50 = vsel %vm655_vm2, %v1208_v22, 0.0 }
 0x113   :  { %680 = vst.msk [vmem:[%s2066_s2 + $0xc0] sm:$0xff] %vm655_vm2, %v496_v26  ;;  %v767_v34 = vsel %vm655_vm2, %v496_v26, 0.0  ;;  %v877_v35 = vmul.f32 %v496_v26, %v496_v26  ;;  %v1209_v36 = vpop.f32.mrb[26].mxu0  ;;  %v1810_v2 = vpop.f32.mrb[24].mxu1 }
 0x114   :  { %v768_v38 = vadd.f32 %v767_v34, %v766_v28  ;;  %v963_v39 = vadd.f32 %v962_v31, %v961_v25  ;;  %683 = vst.msk [vmem:[%s2066_s2 + $0xd8] sm:$0xff] %vm655_vm2, %v1209_v36  ;;  %v499_v40 = vpop.f32.mrb[27].mxu0  ;;  %v880_v51 = vmul.f32 %v1209_v36, %v1209_v36  ;;  %v968_v60 = vsel %vm655_vm2, %v879_v42, 0.0  ;;  %714 = vst.msk [vmem:[%s2066_s2 + $0x1d0] sm:$0xff] %vm655_vm2, %v1810_v2  ;;  %v1821_v8 = vpop.f32.mrb[25].mxu1 }
 0x115   :  { %v964_v43 = vsel %vm655_vm2, %v877_v35, 0.0  ;;  %681 = vst.msk [vmem:[%s2066_s2 + $0xc8] sm:$0xff] %vm655_vm2, %v499_v40  ;;  %v769_v44 = vsel %vm655_vm2, %v499_v40, 0.0  ;;  %v878_v45 = vmul.f32 %v499_v40, %v499_v40  ;;  %v773_v61 = vsel %vm655_vm2, %v1209_v36, 0.0  ;;  %712 = vst.msk [vmem:[%s2066_s2 + $0x1c0] sm:$0xff] %vm655_vm2, %v1821_v8  ;;  %v1834_v13 = vpop.f32.mrb[26].mxu1 }
 0x116   :  { %v965_v46 = vadd.f32 %v964_v43, %v963_v39  ;;  %v770_v47 = vadd.f32 %v769_v44, %v768_v38  ;;  %v970_v9 = vsel %vm655_vm2, %v880_v51, 0.0  ;;  %715 = vst.msk [vmem:[%s2066_s2 + $0x1d8] sm:$0xff] %vm655_vm2, %v1834_v13  ;;  %v1845_v18 = vpop.f32.mrb[27].mxu1  ;;  %v885_v38 = vmul.f32 %v1508_v59, %v1508_v59 }
 0x117   :  { %v966_v53 = vsel %vm655_vm2, %v878_v45, 0.0  ;;  %713 = vst.msk [vmem:[%s2066_s2 + $0x1c8] sm:$0xff] %vm655_vm2, %v1845_v18  ;;  %v783_v44 = vsel %vm655_vm2, %v1508_v59, 0.0 }
 0x118   :  { %v772_v56 = vadd.f32 %v771_v50, %v770_v47  ;;  %v967_v57 = vadd.f32 %v966_v53, %v965_v46  ;;  %v980_v53 = vsel %vm655_vm2, %v885_v38, 0.0 }
 0x119   :  { %v1212_v1 = vpop.f32.mrb[28].mxu0 }
 0x11a   :  { %v969_v3 = vadd.f32 %v968_v60, %v967_v57  ;;  %686 = vst.msk [vmem:[%s2066_s2 + $0xf0] sm:$0xff] %vm655_vm2, %v1212_v1  ;;  %v512_v6 = vpop.f32.mrb[29].mxu0  ;;  %v774_v7 = vadd.f32 %v773_v61, %v772_v56  ;;  %v883_v20 = vmul.f32 %v1212_v1, %v1212_v1  ;;  %v779_v34 = vsel %vm655_vm2, %v1212_v1, 0.0 }
 0x11b   :  { %684 = vst.msk [vmem:[%s2066_s2 + $0xe0] sm:$0xff] %vm655_vm2, %v512_v6  ;;  %v775_v10 = vsel %vm655_vm2, %v512_v6, 0.0  ;;  %v881_v11 = vmul.f32 %v512_v6, %v512_v6  ;;  %v1213_v12 = vpop.f32.mrb[30].mxu0  ;;  %v1866_v45 = vpop.f32.mrb[28].mxu1  ;;  %v886_v56 = vmul.f32 %v1532_v4, %v1532_v4  ;;  %v887_v1 = vmul.f32 %v1497_v55, %v1497_v55 }
 0x11c   :  { %v776_v14 = vadd.f32 %v775_v10, %v774_v7  ;;  %v971_v15 = vadd.f32 %v970_v9, %v969_v3  ;;  %687 = vst.msk [vmem:[%s2066_s2 + $0xf8] sm:$0xff] %vm655_vm2, %v1213_v12  ;;  %v515_v17 = vpop.f32.mrb[31].mxu0  ;;  %v884_v35 = vmul.f32 %v1213_v12, %v1213_v12  ;;  %v976_v42 = vsel %vm655_vm2, %v883_v20, 0.0  ;;  %718 = vst.msk [vmem:[%s2066_s2 + $0x1f0] sm:$0xff] %vm655_vm2, %v1866_v45  ;;  %v1873_v50 = vpop.f32.mrb[29].mxu1 }
 0x11d   :  { %v972_v22 = vsel %vm655_vm2, %v881_v11, 0.0  ;;  %685 = vst.msk [vmem:[%s2066_s2 + $0xe8] sm:$0xff] %vm655_vm2, %v515_v17  ;;  %v777_v25 = vsel %vm655_vm2, %v515_v17, 0.0  ;;  %v882_v26 = vmul.f32 %v515_v17, %v515_v17  ;;  %v781_v43 = vsel %vm655_vm2, %v1213_v12, 0.0  ;;  %716 = vst.msk [vmem:[%s2066_s2 + $0x1e0] sm:$0xff] %vm655_vm2, %v1873_v50  ;;  %v1884_v59 = vpop.f32.mrb[30].mxu1 }
 0x11e   :  { %v973_v28 = vadd.f32 %v972_v22, %v971_v15  ;;  %v778_v31 = vadd.f32 %v777_v25, %v776_v14  ;;  %v978_v51 = vsel %vm655_vm2, %v884_v35, 0.0  ;;  %719 = vst.msk [vmem:[%s2066_s2 + $0x1f8] sm:$0xff] %vm655_vm2, %v1884_v59  ;;  %v1891_v61 = vpop.f32.mrb[31].mxu1  ;;  %v785_v3 = vsel %vm655_vm2, %v1532_v4, 0.0 }
 0x11f   :  { %v974_v36 = vsel %vm655_vm2, %v882_v26, 0.0  ;;  %717 = vst.msk [vmem:[%s2066_s2 + $0x1e8] sm:$0xff] %vm655_vm2, %v1891_v61  ;;  %v787_v9 = vsel %vm655_vm2, %v1497_v55, 0.0  ;;  %v888_v10 = vmul.f32 %v1521_v0, %v1521_v0  ;;  %v982_v11 = vsel %vm655_vm2, %v886_v56, 0.0  ;;  %s1316_s2 = smov [#allocation2]  }
 0x120   :  { %v780_v39 = vadd.f32 %v779_v34, %v778_v31  ;;  %v975_v40 = vadd.f32 %v974_v36, %v973_v28  ;;  %v889_v12 = vmul.f32 %v1560_v23, %v1560_v23  ;;  %v984_v15 = vsel %vm655_vm2, %v887_v1, 0.0  ;;  %s1064_s9 = sshll.u32 %s1316_s2, 4  ;;  %s1065_s9 = int_to_ptr.vmem [resolvable:$true] %s1064_s9 }
 0x121   :  { %v789_v17 = vsel %vm655_vm2, %v1521_v0, 0.0  ;;  %v791_v20 = vsel %vm655_vm2, %v1560_v23, 0.0  ;;  %v986_v25 = vsel %vm655_vm2, %v888_v10, 0.0  ;;  %v890_v28 = vmul.f32 %v1585_v33, %v1585_v33  ;;  %s1291_s10 = scalar_lea.vmem %s1065_s9, 32  ;;  %p1296_p1 = scmp.lt.s32.totalorder %s1065_s9, %s1065_s9 }
 0x122   :  { %v977_v46 = vadd.f32 %v976_v42, %v975_v40  ;;  %v782_v47 = vadd.f32 %v781_v43, %v780_v39  ;;  %v988_v26 = vsel %vm655_vm2, %v889_v12, 0.0  ;;  %v891_v35 = vmul.f32 %v1549_v19, %v1549_v19  ;;  %p1292_p0 = scmp.ne.s32.totalorder %s1065_s9, %s1291_s10  ;;  %p1297_p2 = scmp.lt.s32.totalorder %s1291_s10, %s1291_s10 }
 0x123   :  { %v793_v0 = vsel %vm655_vm2, %v1585_v33, 0.0  ;;  %v795_v23 = vsel %vm655_vm2, %v1549_v19, 0.0  ;;  %v892_v39 = vmul.f32 %v1574_v29, %v1574_v29  ;;  %v990_v40 = vsel %vm655_vm2, %v890_v28, 0.0 }
 0x124   :  { %v784_v57 = vadd.f32 %v783_v44, %v782_v47  ;;  %v979_v60 = vadd.f32 %v978_v51, %v977_v46  ;;  %v893_v42 = vmul.f32 %v1613_v52, %v1613_v52  ;;  %v992_v46 = vsel %vm655_vm2, %v891_v35, 0.0  ;;  %p1298_p3 = por %p1297_p2, %p1296_p1 }
 0x125   :  { %v797_v33 = vsel %vm655_vm2, %v1574_v29, 0.0  ;;  %v799_v47 = vsel %vm655_vm2, %v1613_v52, 0.0  ;;  %v801_v29 = vsel %vm655_vm2, %v1637_v63, 0.0  ;;  %v803_v52 = vsel %vm655_vm2, %v1602_v48, 0.0 }
 0x126   :  { %v981_v6 = vadd.f32 %v980_v53, %v979_v60  ;;  %v786_v7 = vadd.f32 %v785_v3, %v784_v57  ;;  %v994_v53 = vsel %vm655_vm2, %v892_v39, 0.0  ;;  %v996_v56 = vsel %vm655_vm2, %v893_v42, 0.0  ;;  %p1299_p4 = pnand %p1298_p3, %p1292_p0 }
 0x127   :  { %v894_v57 = vmul.f32 %v1637_v63, %v1637_v63  ;;  %v895_v3 = vmul.f32 %v1602_v48, %v1602_v48  ;;  %v805_v63 = vsel %vm655_vm2, %v1626_v58, 0.0  ;;  %v899_v28 = vmul.f32 %v1654_v16, %v1654_v16 }
 0x128   :  { %v788_v4 = vadd.f32 %v787_v9, %v786_v7  ;;  %v983_v14 = vadd.f32 %v982_v11, %v981_v6  ;;  %v896_v9 = vmul.f32 %v1626_v58, %v1626_v58  ;;  %v897_v11 = vmul.f32 %v1665_v21, %v1665_v21 }
 0x129   :  { %v998_v10 = vsel %vm655_vm2, %v894_v57, 0.0  ;;  %v809_v58 = vsel %vm655_vm2, %v1689_v32, 0.0  ;;  %v900_v35 = vmul.f32 %v1678_v27, %v1678_v27  ;;  %v1008_v39 = vsel %vm655_vm2, %v899_v28, 0.0 }
 0x12a   :  { %v985_v22 = vadd.f32 %v984_v15, %v983_v14  ;;  %v790_v55 = vadd.f32 %v789_v17, %v788_v4  ;;  %v1000_v14 = vsel %vm655_vm2, %v895_v3, 0.0  ;;  %v807_v15 = vsel %vm655_vm2, %v1665_v21, 0.0 }
 0x12b   :  { %v811_v21 = vsel %vm655_vm2, %v1654_v16, 0.0 }
 0x12c   :  { %v792_v31 = vadd.f32 %v791_v20, %v790_v55  ;;  %v987_v34 = vadd.f32 %v986_v25, %v985_v22  ;;  %v1002_v20 = vsel %vm655_vm2, %v896_v9, 0.0  ;;  %v1004_v22 = vsel %vm655_vm2, %v897_v11, 0.0 }
 0x12d   :  { %v898_v55 = vmul.f32 %v1689_v32, %v1689_v32  ;;  %v813_v32 = vsel %vm655_vm2, %v1678_v27, 0.0  ;;  %v817_v27 = vsel %vm655_vm2, %v1741_v5, 0.0 }
 0x12e   :  { %v989_v36 = vadd.f32 %v988_v26, %v987_v34  ;;  %v794_v38 = vadd.f32 %v793_v0, %v792_v31 }
 0x12f   :  { %v1006_v0 = vsel %vm655_vm2, %v898_v55, 0.0 }
 0x130   :  { %v796_v43 = vadd.f32 %v795_v23, %v794_v38  ;;  %v991_v44 = vadd.f32 %v990_v40, %v989_v36  ;;  %v901_v36 = vmul.f32 %v1717_v54, %v1717_v54  ;;  %v815_v40 = vsel %vm655_vm2, %v1717_v54, 0.0 }
 0x131   :  { %v819_v54 = vsel %vm655_vm2, %v1706_v49, 0.0 }
 0x132   :  { %v993_v51 = vadd.f32 %v992_v46, %v991_v44  ;;  %v798_v19 = vadd.f32 %v797_v33, %v796_v43  ;;  %v1010_v43 = vsel %vm655_vm2, %v900_v35, 0.0  ;;  %v1012_v44 = vsel %vm655_vm2, %v901_v36, 0.0 }
 0x133   :  { %v902_v46 = vmul.f32 %v1741_v5, %v1741_v5  ;;  %v821_v5 = vsel %vm655_vm2, %v1730_v62, 0.0  ;;  %v911_v35 = vmul.f32 %v1810_v2, %v1810_v2 }
 0x134   :  { %v800_v60 = vadd.f32 %v799_v47, %v798_v19  ;;  %v995_v1 = vadd.f32 %v994_v53, %v993_v51  ;;  %v903_v51 = vmul.f32 %v1706_v49, %v1706_v49 }
 0x135   :  { %v1014_v57 = vsel %vm655_vm2, %v902_v46, 0.0 }
 0x136   :  { %v997_v6 = vadd.f32 %v996_v56, %v995_v1  ;;  %v802_v7 = vadd.f32 %v801_v29, %v800_v60  ;;  %v904_v56 = vmul.f32 %v1730_v62, %v1730_v62  ;;  %v905_v60 = vmul.f32 %v1769_v30, %v1769_v30 }
 0x137   :  { %v1016_v29 = vsel %vm655_vm2, %v903_v51, 0.0  ;;  %v825_v62 = vsel %vm655_vm2, %v1793_v41, 0.0 }
 0x138   :  { %v804_v12 = vadd.f32 %v803_v52, %v802_v7  ;;  %v999_v4 = vadd.f32 %v998_v10, %v997_v6  ;;  %v823_v6 = vsel %vm655_vm2, %v1769_v30, 0.0  ;;  %v1018_v52 = vsel %vm655_vm2, %v904_v56, 0.0 }
 0x139   :  { %v1020_v9 = vsel %vm655_vm2, %v905_v60, 0.0  ;;  %v906_v10 = vmul.f32 %v1793_v41, %v1793_v41  ;;  %v827_v30 = vsel %vm655_vm2, %v1758_v24, 0.0  ;;  %v829_v41 = vsel %vm655_vm2, %v1782_v37, 0.0 }
 0x13a   :  { %v1001_v17 = vadd.f32 %v1000_v14, %v999_v4  ;;  %v806_v48 = vadd.f32 %v805_v63, %v804_v12  ;;  %v907_v4 = vmul.f32 %v1758_v24, %v1758_v24 }
 0x13c   :  { %v808_v25 = vadd.f32 %v807_v15, %v806_v48  ;;  %v1003_v26 = vadd.f32 %v1002_v20, %v1001_v17  ;;  %v908_v15 = vmul.f32 %v1782_v37, %v1782_v37  ;;  %v1022_v17 = vsel %vm655_vm2, %v906_v10, 0.0 }
 0x13d   :  { %v909_v48 = vmul.f32 %v1821_v8, %v1821_v8  ;;  %v1024_v55 = vsel %vm655_vm2, %v907_v4, 0.0  ;;  %v833_v37 = vsel %vm655_vm2, %v1845_v18, 0.0 }
 0x13e   :  { %v1005_v31 = vadd.f32 %v1004_v22, %v1003_v26  ;;  %v810_v34 = vadd.f32 %v809_v58, %v808_v25  ;;  %v831_v25 = vsel %vm655_vm2, %v1821_v8, 0.0  ;;  %v1026_v28 = vsel %vm655_vm2, %v908_v15, 0.0 }
 0x13f   :  { %v1028_v58 = vsel %vm655_vm2, %v909_v48, 0.0  ;;  %v835_v8 = vsel %vm655_vm2, %v1810_v2, 0.0 }
 0x140   :  { %v812_v38 = vadd.f32 %v811_v21, %v810_v34  ;;  %v1007_v23 = vadd.f32 %v1006_v0, %v1005_v31  ;;  %v910_v31 = vmul.f32 %v1845_v18, %v1845_v18  ;;  %v837_v18 = vsel %vm655_vm2, %v1834_v13, 0.0 }
 0x142   :  { %v1009_v42 = vadd.f32 %v1008_v39, %v1007_v23  ;;  %v814_v16 = vadd.f32 %v813_v32, %v812_v38  ;;  %v912_v38 = vmul.f32 %v1834_v13, %v1834_v13  ;;  %v1030_v23 = vsel %vm655_vm2, %v910_v31, 0.0 }
 0x143   :  { %v913_v39 = vmul.f32 %v1873_v50, %v1873_v50  ;;  %v841_v13 = vsel %vm655_vm2, %v1891_v61, 0.0 }
 0x144   :  { %v816_v33 = vadd.f32 %v815_v40, %v814_v16  ;;  %v1011_v47 = vadd.f32 %v1010_v43, %v1009_v42  ;;  %v1032_v42 = vsel %vm655_vm2, %v911_v35, 0.0  ;;  %v839_v16 = vsel %vm655_vm2, %v1873_v50, 0.0 }
 0x145   :  { %v1036_v46 = vsel %vm655_vm2, %v913_v39, 0.0  ;;  %v843_v50 = vsel %vm655_vm2, %v1866_v45, 0.0 }
 0x146   :  { %v1013_v19 = vadd.f32 %v1012_v44, %v1011_v47  ;;  %v818_v53 = vadd.f32 %v817_v27, %v816_v33  ;;  %v1034_v44 = vsel %vm655_vm2, %v912_v38, 0.0  ;;  %v914_v33 = vmul.f32 %v1891_v61, %v1891_v61 }
 0x147   :  { %v915_v27 = vmul.f32 %v1866_v45, %v1866_v45 }
 0x148   :  { %v820_v1 = vadd.f32 %v819_v54, %v818_v53  ;;  %v1015_v3 = vadd.f32 %v1014_v57, %v1013_v19  ;;  %v916_v54 = vmul.f32 %v1884_v59, %v1884_v59  ;;  %v1038_v56 = vsel %vm655_vm2, %v914_v33, 0.0 }
 0x14a   :  { %v1017_v7 = vadd.f32 %v1016_v29, %v1015_v3  ;;  %v822_v49 = vadd.f32 %v821_v5, %v820_v1  ;;  %v1040_v1 = vsel %vm655_vm2, %v915_v27, 0.0  ;;  %v845_v3 = vsel %vm655_vm2, %v1884_v59, 0.0 }
 0x14b   :  { %v1042_v61 = vsel %vm655_vm2, %v916_v54, 0.0 }
 0x14c   :  { %v824_v11 = vadd.f32 %v823_v6, %v822_v49  ;;  %v1019_v12 = vadd.f32 %v1018_v52, %v1017_v7 }
 0x14e   :  { %v1021_v14 = vadd.f32 %v1020_v9, %v1019_v12  ;;  %v826_v63 = vadd.f32 %v825_v62, %v824_v11 }
 0x150   :  { %v828_v20 = vadd.f32 %v827_v30, %v826_v63  ;;  %v1023_v22 = vadd.f32 %v1022_v17, %v1021_v14  ;;  %v1050_v30 = vld [vmem:[#allocation2] sm:$0x3] }
 0x152   :  { %v1025_v26 = vadd.f32 %v1024_v55, %v1023_v22  ;;  %v830_v24 = vadd.f32 %v829_v41, %v828_v20 }
 0x154   :  { %v832_v34 = vadd.f32 %v831_v25, %v830_v24  ;;  %v1027_v21 = vadd.f32 %v1026_v28, %v1025_v26 }
 0x156   :  { %v1029_v0 = vadd.f32 %v1028_v58, %v1027_v21  ;;  %v834_v36 = vadd.f32 %v833_v37, %v832_v34 }
 0x158   :  { %v836_v32 = vadd.f32 %v835_v8, %v834_v36  ;;  %v1031_v40 = vadd.f32 %v1030_v23, %v1029_v0 }
 0x15a   :  { %v1033_v43 = vadd.f32 %v1032_v42, %v1031_v40  ;;  %v838_v2 = vadd.f32 %v837_v18, %v836_v32 }
 0x15c   :  { %v840_v47 = vadd.f32 %v839_v16, %v838_v2  ;;  %v1035_v51 = vadd.f32 %v1034_v44, %v1033_v43 }
 0x15e   :  { %v1037_v19 = vadd.f32 %v1036_v46, %v1035_v51  ;;  %v842_v53 = vadd.f32 %v841_v13, %v840_v47 }
 0x160   :  { %v844_v57 = vadd.f32 %v843_v50, %v842_v53  ;;  %v1039_v60 = vadd.f32 %v1038_v56, %v1037_v19 }
 0x162   :  { %v846_v29 = vadd.f32 %v845_v3, %v844_v57  ;;  %v1041_v5 = vadd.f32 %v1040_v1, %v1039_v60 }
 0x164   :  { %v847_v6 = vrot.slane %v846_v29, 4  ;;  %v1043_v7 = vadd.f32 %v1042_v61, %v1041_v5 }
 0x166   :  { %v848_v49 = vadd.f32 %v847_v6, %v846_v29  ;;  %v1044_v45 = vrot.slane %v1043_v7, 4 }
 0x168   :  { %v849_v52 = vrot.slane %v848_v49, 2  ;;  %v1045_v9 = vadd.f32 %v1044_v45, %v1043_v7 }
 0x16a   :  { %v850_v10 = vadd.f32 %v849_v52, %v848_v49  ;;  %v1046_v11 = vrot.slane %v1045_v9, 2 }
 0x16c   :  { %v851_v12 = vrot.slane %v850_v10, 1  ;;  %v1047_v4 = vadd.f32 %v1046_v11, %v1045_v9 }
 0x16e   :  { %v1048_v62 = vrot.slane %v1047_v4, 1  ;;  %v852_v14 = vadd.f32 %v851_v12, %v850_v10 }
 0x170   :  { %v1049_v63 = vadd.f32 %v1048_v62, %v1047_v4 }
 0x172   :  { %v1052_v59 = vsel %vm1051_vm4, %v852_v14, %v1049_v63 }
 0x173   :  { %v1053_v15 = vadd.f32 %v1052_v59, %v1050_v30 }
 0x175   :  { %1055 = vst.msk [vmem:[#allocation2] sm:$0x3] %vm19_vm3, %v1053_v15 }
 0x176   :  { %1302 = shalt.err (!%p1299_p4)
}
 0x177   :  { %s1303_s13 = scalar_lea.hbm %s2067_s3, 32 }
 0x178   :  { %p1304_p5 = scmp.ne.s32.totalorder %s2067_s3, %s1303_s13  ;;  %p1307_p6 = scmp.lt.u32.totalorder %s1303_s13, %s2067_s3 }
 0x17a   :  { %p1309_p7 = pnand %p1307_p6, %p1304_p5 }
 0x17c   :  { %1312 = shalt.err (!%p1309_p7)
}
 0x17d   :  { %1067 = dma.vmem_to_hbm [thread:$0]  %s1065_s9, 32, %s2067_s3, [#allocation3]  }
 0x17e   :  { %1313 = dma.done.wait [#allocation3], 32  }
 0x17f   :  { %1314 = vsyncadd [#allocation3], 4294967264 }
 0x180   :  { %1073 = vsyncpa [#allocation3], 1 }

</bundles_post_ra>
